<compile_context>
chip_gen: v7x
topology: tpu7x:2x2x1
jax: 0.10.0
libtpu: 0.0.40
codegen_flags: <defaults>
</compile_context>

<pallas_src>
import jax
import jax.numpy as jnp
import numpy as np
from jax.experimental import pallas as pl
from jax.experimental.pallas import tpu as pltpu


def _round_up(n, m):
    return ((n + m - 1) // m) * m


# -----------------------------------------------------------------------------
# Kernel: one batch tile of the full 5-Linear forward pass, fully on-chip.
# -----------------------------------------------------------------------------
def _denoiser_kernel(y_ref, x_ref,
                     w1_ref, w2_ref, w3yt_ref, w3x_ref, w4_ref, w5_ref,
                     bias_ref, o_ref):
    f32 = jnp.float32
    cdt = w1_ref.dtype                 # compute dtype for MXU inputs
    Hp = w1_ref.shape[1]               # padded hidden dim (multiple of 128)
    Fp = w5_ref.shape[1]               # padded output dim (multiple of 128)

    def bias(idx, width):
        # Packed slab [b1 | b2 | b3 | b4 | b5]; static, 128-aligned lane slice.
        off = idx * Hp
        return bias_ref[:, off:off + width]

    x = x_ref[...]                     # (TB, S8)   compute dtype
    y = y_ref[...]                     # (TB, F1) = [noisy_y | t/400 | 0-pad]

    # --- state_embed: Linear -> ReLU -> Linear -------------------------------
    h1 = jnp.dot(x, w1_ref[...], preferred_element_type=f32) + bias(0, Hp)
    h1 = jnp.maximum(h1, 0.0)
    xe = jnp.dot(h1.astype(cdt), w2_ref[...], preferred_element_type=f32) + bias(1, Hp)

    # --- noise_predictor layer 0:
    #     cat([noisy_y, x_embed, t/400]) @ W3 == y_aug @ W3_[y,t] + x_embed @ W3_x
    acc = jnp.dot(y, w3yt_ref[...], preferred_element_type=f32)
    acc = acc + jnp.dot(xe.astype(cdt), w3x_ref[...], preferred_element_type=f32)
    h3 = jnp.maximum(acc + bias(2, Hp), 0.0)

    # --- noise_predictor layers 1..2 -----------------------------------------
    h4 = jnp.dot(h3.astype(cdt), w4_ref[...], preferred_element_type=f32) + bias(3, Hp)
    h4 = jnp.maximum(h4, 0.0)
    out = jnp.dot(h4.astype(cdt), w5_ref[...], preferred_element_type=f32) + bias(4, Fp)

    o_ref[...] = out.astype(o_ref.dtype)     # lane-dense (Fp = multiple of 128)


# -----------------------------------------------------------------------------
# pallas_call wrapper: grid over batch tiles only; weights VMEM-resident.
# -----------------------------------------------------------------------------
def _forward_pallas(padded, y_aug, x_pad, *, block_b):
    B, F1 = y_aug.shape
    S8 = x_pad.shape[1]
    Hp = padded["w1"].shape[1]
    Fp = padded["w5"].shape[1]
    assert B % block_b == 0

    def act_spec(feat):
        # Batch-tiled activations / output: block index advances with the grid.
        return pl.BlockSpec((block_b, feat), lambda i: (i, 0))

    def const_spec(shape):
        # Constant block index -> DMA'd once, stays resident across grid steps.
        return pl.BlockSpec(shape, lambda i: (0, 0))

    return pl.pallas_call(
        _denoiser_kernel,
        out_shape=jax.ShapeDtypeStruct((B, Fp), jnp.float32),
        grid=(B // block_b,),
        in_specs=[
            act_spec(F1),                     # y_aug = [noisy_y | t/400 | pad]
            act_spec(S8),                     # x (row-padded, col-padded to 8)
            const_spec((S8, Hp)),             # W1
            const_spec((Hp, Hp)),             # W2
            const_spec((F1, Hp)),             # W3 rows for [noisy_y, t]
            const_spec((Hp, Hp)),             # W3 rows for x_embed
            const_spec((Hp, Hp)),             # W4
            const_spec((Hp, Fp)),             # W5
            const_spec((1, 4 * Hp + Fp)),     # packed f32 biases
        ],
        out_specs=act_spec(Fp),
        compiler_params=pltpu.CompilerParams(
            dimension_semantics=("parallel",),   # shard batch tiles over TCs
            vmem_limit_bytes=32 * 1024 * 1024,
        ),
    )(y_aug, x_pad,
      padded["w1"], padded["w2"], padded["w3_yt"], padded["w3_x"],
      padded["w4"], padded["w5"], padded["bias"])


# -----------------------------------------------------------------------------
# Parameters. "Master" f32 weights in (in, out) layout (y = x @ W + b), plus a
# host-side padded/packed copy used by the kernel.
# -----------------------------------------------------------------------------
def _init_params(key, state_dim, force_dim, hidden_dim):
    def linear(k, fan_in, fan_out):
        kw, kb = jax.random.split(k)
        bound = 1.0 / np.sqrt(fan_in)
        w = jax.random.uniform(kw, (fan_in, fan_out), jnp.float32, -bound, bound)
        b = jax.random.uniform(kb, (fan_out,), jnp.float32, -bound, bound)
        return w, b

    keys = jax.random.split(key, 5)
    w1, b1 = linear(keys[0], state_dim, hidden_dim)
    w2, b2 = linear(keys[1], hidden_dim, hidden_dim)
    w3, b3 = linear(keys[2], force_dim + hidden_dim + 1, hidden_dim)
    w4, b4 = linear(keys[3], hidden_dim, hidden_dim)
    w5, b5 = linear(keys[4], hidden_dim, force_dim)
    return dict(w1=w1, b1=b1, w2=w2, b2=b2, w3=w3, b3=b3,
                w4=w4, b4=b4, w5=w5, b5=b5)


def _pad_params(p, state_dim, force_dim, hidden_dim, compute_dtype,
                lane=128, sub=8):
    F, H, S = force_dim, hidden_dim, state_dim
    Hp = _round_up(H, lane)          # hidden padded to lane-dense 128
    Fp = _round_up(F, lane)          # output padded to lane-dense 128
    S8 = _round_up(S, sub)
    F1 = _round_up(F + 1, sub)       # [noisy_y | t/400] padded to sublane mult.

    def pad2(a, r, c):
        return jnp.pad(a, ((0, r - a.shape[0]), (0, c - a.shape[1])))

    def padb(b, c):
        return jnp.pad(b.reshape(1, -1), ((0, 0), (0, c - b.shape[0])))

    # Split W3 along the concat axis: [noisy_y (F), x_embed (H), t (1)].
    w3 = p["w3"]
    w3_y = w3[:F]
    w3_x = w3[F:F + H]
    w3_t = w3[F + H:F + H + 1]
    w3_yt = jnp.concatenate([w3_y, w3_t], axis=0)        # (F+1, H)

    cd = compute_dtype
    padded = dict(
        w1=pad2(p["w1"], S8, Hp).astype(cd),
        w2=pad2(p["w2"], Hp, Hp).astype(cd),
        w3_yt=pad2(w3_yt, F1, Hp).astype(cd),
        w3_x=pad2(w3_x, Hp, Hp).astype(cd),
        w4=pad2(p["w4"], Hp, Hp).astype(cd),
        w5=pad2(p["w5"], Hp, Fp).astype(cd),
        bias=jnp.concatenate(                             # f32 slab (1, 4Hp+Fp)
            [padb(p["b1"], Hp), padb(p["b2"], Hp), padb(p["b3"], Hp),
             padb(p["b4"], Hp), padb(p["b5"], Fp)], axis=1),
    )
    return padded, (S8, F1, Hp, Fp)


class ConditionalDenoiserPallas:
    """Pallas-TPU implementation of ConditionalDenoiser.forward."""

    def __init__(self, state_dim, force_dim, hidden_dim=64, *, key,
                 compute_dtype=jnp.bfloat16, max_batch_tile=2048):
        self.state_dim = state_dim
        self.force_dim = force_dim
        self.hidden_dim = hidden_dim
        self.compute_dtype = compute_dtype
        self.max_batch_tile = max_batch_tile
        self.params = _init_params(key, state_dim, force_dim, hidden_dim)
        self.padded, dims = _pad_params(self.params, state_dim, force_dim,
                                        hidden_dim, compute_dtype)
        self.S8, self.F1, self.Hp, self.Fp = dims

    def _tiles(self, B):
        # Tile choice: multiple of 8, <= max_batch_tile, minimal row-padding
        # waste, and >= 2 tiles whenever possible (v7x megacore sharding).
        B8 = _round_up(max(B, 1), 8)
        if B8 <= 8:
            return B8, B8
        n = max(2, -(-B8 // self.max_batch_tile))
        tb = _round_up(-(-B8 // n), 8)
        return tb, n * tb

    def __call__(self, noisy_y, x, t):
        noisy_y = jnp.asarray(noisy_y, jnp.float32)
        x = jnp.asarray(x, jnp.float32)
        B = noisy_y.shape[0]
        F, S = self.force_dim, self.state_dim

        t = jnp.asarray(t, jnp.float32)
        if t.ndim == 0:
            t = jnp.broadcast_to(t, (B,))
        t_col = (t / 400.0).reshape(B, 1)

        # Fold t/400 into the "y" operand: [noisy_y | t/400 | 0-pad].
        y_aug = jnp.zeros((B, self.F1), jnp.float32)
        y_aug = y_aug.at[:, :F].set(noisy_y)
        y_aug = y_aug.at[:, F:F + 1].set(t_col)
        x_pad = jnp.pad(x, ((0, 0), (0, self.S8 - S)))

        tb, padded_b = self._tiles(B)

        def pad_rows(a):
            return jnp.pad(a, ((0, padded_b - B), (0, 0)))

        cd = self.compute_dtype
        out = _forward_pallas(self.padded,
                              pad_rows(y_aug).astype(cd),
                              pad_rows(x_pad).astype(cd),
                              block_b=tb)
        return out[:B, :F]


# -----------------------------------------------------------------------------
# Pure-JAX reference: original (unpadded) weights, PyTorch structure (explicit
# concat), mirroring the kernel's numerics (cd-rounded matmul inputs, f32 acc).
# -----------------------------------------------------------------------------
def _reference_forward(params, noisy_y, x, t, compute_dtype):
    f32 = jnp.float32
    cd = compute_dtype

    def mm(a, w):
        return jnp.dot(a.astype(cd).astype(f32), w.astype(cd).astype(f32))

    noisy_y = jnp.asarray(noisy_y, f32)
    x = jnp.asarray(x, f32)
    B = noisy_y.shape[0]
    t = jnp.asarray(t, f32)
    if t.ndim == 0:
        t = jnp.broadcast_to(t, (B,))
    t_embed = (t / 400.0).reshape(B, 1)

    h1 = jnp.maximum(mm(x, params["w1"]) + params["b1"], 0.0)
    x_embed = mm(h1, params["w2"]) + params["b2"]
    combined = jnp.concatenate([noisy_y, x_embed, t_embed], axis=-1)
    h3 = jnp.maximum(mm(combined, params["w3"]) + params["b3"], 0.0)
    h4 = jnp.maximum(mm(h3, params["w4"]) + params["b4"], 0.0)
    return mm(h4, params["w5"]) + params["b5"]


if __name__ == "__main__":
    B, STATE_DIM, FORCE_DIM, HIDDEN_DIM = 32, 16, 8, 64

    key = jax.random.PRNGKey(0)
    k_param, k_y, k_x, k_t = jax.random.split(key, 4)

    model = ConditionalDenoiserPallas(state_dim=STATE_DIM, force_dim=FORCE_DIM,
                                      hidden_dim=HIDDEN_DIM, key=k_param)

    noisy_y = jax.random.normal(k_y, (B, FORCE_DIM), jnp.float32)
    x = jax.random.normal(k_x, (B, STATE_DIM), jnp.float32)
    t = jax.random.randint(k_t, (B,), 0, 400).astype(jnp.float32)

    out = jax.block_until_ready(model(noisy_y, x, t))
    ref = jax.block_until_ready(
        _reference_forward(model.params, noisy_y, x, t, model.compute_dtype))

    assert out.shape == (B, FORCE_DIM)
    np.testing.assert_allclose(np.asarray(out), np.asarray(ref),
                               rtol=2e-3, atol=2e-3)
    print("KERNEL_OK")
</pallas_src>

<mosaic_0001>
module attributes {stable_mosaic.version = 11 : i64} {
  func.func @_denoiser_kernel(%arg0: i32, %arg1: memref<16x16xbf16, #tpu.memory_space<vmem>>, %arg2: memref<16x16xbf16, #tpu.memory_space<vmem>>, %arg3: memref<16x128xbf16, #tpu.memory_space<vmem>>, %arg4: memref<128x128xbf16, #tpu.memory_space<vmem>>, %arg5: memref<16x128xbf16, #tpu.memory_space<vmem>>, %arg6: memref<128x128xbf16, #tpu.memory_space<vmem>>, %arg7: memref<128x128xbf16, #tpu.memory_space<vmem>>, %arg8: memref<128x128xbf16, #tpu.memory_space<vmem>>, %arg9: memref<1x640xf32, #tpu.memory_space<vmem>>, %arg10: memref<16x128xf32, #tpu.memory_space<vmem>>) attributes {dimension_semantics = [#tpu.dimension_semantics<parallel>], iteration_bounds = array<i64: 2>, scalar_prefetch = 0 : i64, scratch_operands = 0 : i64, tpu.core_type = #tpu.core_type<tc>, window_params = [{transform_indices = @transform_0, window_bounds = array<i64: 16, 16>}, {transform_indices = @transform_1, window_bounds = array<i64: 16, 16>}, {pipeline_mode = #tpu.pipeline_mode<synchronous>, transform_indices = @transform_2, window_bounds = array<i64: 16, 128>}, {pipeline_mode = #tpu.pipeline_mode<synchronous>, transform_indices = @transform_3, window_bounds = array<i64: 128, 128>}, {pipeline_mode = #tpu.pipeline_mode<synchronous>, transform_indices = @transform_4, window_bounds = array<i64: 16, 128>}, {pipeline_mode = #tpu.pipeline_mode<synchronous>, transform_indices = @transform_5, window_bounds = array<i64: 128, 128>}, {pipeline_mode = #tpu.pipeline_mode<synchronous>, transform_indices = @transform_6, window_bounds = array<i64: 128, 128>}, {pipeline_mode = #tpu.pipeline_mode<synchronous>, transform_indices = @transform_7, window_bounds = array<i64: 128, 128>}, {pipeline_mode = #tpu.pipeline_mode<synchronous>, transform_indices = @transform_8, window_bounds = array<i64: 1, 640>}, {transform_indices = @transform_9, window_bounds = array<i64: 16, 128>}]} {
    %c0 = arith.constant 0 : index
    %c0_0 = arith.constant 0 : index
    %0 = vector.load %arg2[%c0, %c0_0] : memref<16x16xbf16, #tpu.memory_space<vmem>>, vector<16x16xbf16>
    %c0_1 = arith.constant 0 : index
    %c0_2 = arith.constant 0 : index
    %1 = vector.load %arg1[%c0_1, %c0_2] : memref<16x16xbf16, #tpu.memory_space<vmem>>, vector<16x16xbf16>
    %c0_3 = arith.constant 0 : index
    %c0_4 = arith.constant 0 : index
    %2 = vector.load %arg3[%c0_3, %c0_4] : memref<16x128xbf16, #tpu.memory_space<vmem>>, vector<16x128xbf16>
    %cst = arith.constant dense<0.000000e+00> : vector<16x128xf32>
    %3 = tpu.matmul %0, %2, %cst {dimension_numbers = #tpu.dot_dimension_numbers<[1], [0], [0], [1], [0, 0, 1, 1], [], []>} : vector<16x16xbf16>, vector<16x128xbf16>, vector<16x128xf32> -> vector<16x128xf32>
    %c0_5 = arith.constant 0 : index
    %c0_6 = arith.constant 0 : index
    %4 = vector.load %arg9[%c0_5, %c0_6] : memref<1x640xf32, #tpu.memory_space<vmem>>, vector<1x128xf32>
    %5 = vector.broadcast %4 : vector<1x128xf32> to vector<16x128xf32>
    %6 = arith.addf %3, %5 : vector<16x128xf32>
    %cst_7 = arith.constant 0.000000e+00 : f32
    %7 = vector.broadcast %cst_7 : f32 to vector<16x128xf32>
    %8 = arith.maximumf %6, %7 : vector<16x128xf32>
    %9 = arith.truncf %8 : vector<16x128xf32> to vector<16x128xbf16>
    %c0_8 = arith.constant 0 : index
    %c0_9 = arith.constant 0 : index
    %10 = vector.load %arg4[%c0_8, %c0_9] : memref<128x128xbf16, #tpu.memory_space<vmem>>, vector<128x128xbf16>
    %cst_10 = arith.constant dense<0.000000e+00> : vector<16x128xf32>
    %11 = tpu.matmul %9, %10, %cst_10 {dimension_numbers = #tpu.dot_dimension_numbers<[1], [0], [0], [1], [0, 0, 1, 1], [], []>} : vector<16x128xbf16>, vector<128x128xbf16>, vector<16x128xf32> -> vector<16x128xf32>
    %c0_11 = arith.constant 0 : index
    %c128 = arith.constant 128 : index
    %12 = vector.load %arg9[%c0_11, %c128] : memref<1x640xf32, #tpu.memory_space<vmem>>, vector<1x128xf32>
    %13 = vector.broadcast %12 : vector<1x128xf32> to vector<16x128xf32>
    %14 = arith.addf %11, %13 : vector<16x128xf32>
    %c0_12 = arith.constant 0 : index
    %c0_13 = arith.constant 0 : index
    %15 = vector.load %arg5[%c0_12, %c0_13] : memref<16x128xbf16, #tpu.memory_space<vmem>>, vector<16x128xbf16>
    %cst_14 = arith.constant dense<0.000000e+00> : vector<16x128xf32>
    %16 = tpu.matmul %1, %15, %cst_14 {dimension_numbers = #tpu.dot_dimension_numbers<[1], [0], [0], [1], [0, 0, 1, 1], [], []>} : vector<16x16xbf16>, vector<16x128xbf16>, vector<16x128xf32> -> vector<16x128xf32>
    %17 = arith.truncf %14 : vector<16x128xf32> to vector<16x128xbf16>
    %c0_15 = arith.constant 0 : index
    %c0_16 = arith.constant 0 : index
    %18 = vector.load %arg6[%c0_15, %c0_16] : memref<128x128xbf16, #tpu.memory_space<vmem>>, vector<128x128xbf16>
    %cst_17 = arith.constant dense<0.000000e+00> : vector<16x128xf32>
    %19 = tpu.matmul %17, %18, %cst_17 {dimension_numbers = #tpu.dot_dimension_numbers<[1], [0], [0], [1], [0, 0, 1, 1], [], []>} : vector<16x128xbf16>, vector<128x128xbf16>, vector<16x128xf32> -> vector<16x128xf32>
    %20 = arith.addf %16, %19 : vector<16x128xf32>
    %c0_18 = arith.constant 0 : index
    %c256 = arith.constant 256 : index
    %21 = vector.load %arg9[%c0_18, %c256] : memref<1x640xf32, #tpu.memory_space<vmem>>, vector<1x128xf32>
    %22 = vector.broadcast %21 : vector<1x128xf32> to vector<16x128xf32>
    %23 = arith.addf %20, %22 : vector<16x128xf32>
    %cst_19 = arith.constant 0.000000e+00 : f32
    %24 = vector.broadcast %cst_19 : f32 to vector<16x128xf32>
    %25 = arith.maximumf %23, %24 : vector<16x128xf32>
    %26 = arith.truncf %25 : vector<16x128xf32> to vector<16x128xbf16>
    %c0_20 = arith.constant 0 : index
    %c0_21 = arith.constant 0 : index
    %27 = vector.load %arg7[%c0_20, %c0_21] : memref<128x128xbf16, #tpu.memory_space<vmem>>, vector<128x128xbf16>
    %cst_22 = arith.constant dense<0.000000e+00> : vector<16x128xf32>
    %28 = tpu.matmul %26, %27, %cst_22 {dimension_numbers = #tpu.dot_dimension_numbers<[1], [0], [0], [1], [0, 0, 1, 1], [], []>} : vector<16x128xbf16>, vector<128x128xbf16>, vector<16x128xf32> -> vector<16x128xf32>
    %c0_23 = arith.constant 0 : index
    %c384 = arith.constant 384 : index
    %29 = vector.load %arg9[%c0_23, %c384] : memref<1x640xf32, #tpu.memory_space<vmem>>, vector<1x128xf32>
    %30 = vector.broadcast %29 : vector<1x128xf32> to vector<16x128xf32>
    %31 = arith.addf %28, %30 : vector<16x128xf32>
    %cst_24 = arith.constant 0.000000e+00 : f32
    %32 = vector.broadcast %cst_24 : f32 to vector<16x128xf32>
    %33 = arith.maximumf %31, %32 : vector<16x128xf32>
    %34 = arith.truncf %33 : vector<16x128xf32> to vector<16x128xbf16>
    %c0_25 = arith.constant 0 : index
    %c0_26 = arith.constant 0 : index
    %35 = vector.load %arg8[%c0_25, %c0_26] : memref<128x128xbf16, #tpu.memory_space<vmem>>, vector<128x128xbf16>
    %cst_27 = arith.constant dense<0.000000e+00> : vector<16x128xf32>
    %36 = tpu.matmul %34, %35, %cst_27 {dimension_numbers = #tpu.dot_dimension_numbers<[1], [0], [0], [1], [0, 0, 1, 1], [], []>} : vector<16x128xbf16>, vector<128x128xbf16>, vector<16x128xf32> -> vector<16x128xf32>
    %c0_28 = arith.constant 0 : index
    %c512 = arith.constant 512 : index
    %37 = vector.load %arg9[%c0_28, %c512] : memref<1x640xf32, #tpu.memory_space<vmem>>, vector<1x128xf32>
    %38 = vector.broadcast %37 : vector<1x128xf32> to vector<16x128xf32>
    %39 = arith.addf %36, %38 : vector<16x128xf32>
    %c0_29 = arith.constant 0 : index
    %c0_30 = arith.constant 0 : index
    %40 = vector.load %arg10[%c0_29, %c0_30] : memref<16x128xf32, #tpu.memory_space<vmem>>, vector<16x128xf32>
    tpu.vector_store %arg10[%c0_29, %c0_30], %39 {strides = array<i32>} : memref<16x128xf32, #tpu.memory_space<vmem>>, vector<16x128xf32>,
    return
  }
  func.func @transform_0(%arg0: i32) -> (i32, i32) {
    %c0_i32 = arith.constant 0 : i32
    %c0_i32_0 = arith.constant 0 : i32
    return %arg0, %c0_i32 : i32, i32
  }
  func.func @transform_1(%arg0: i32) -> (i32, i32) {
    %c0_i32 = arith.constant 0 : i32
    %c0_i32_0 = arith.constant 0 : i32
    return %arg0, %c0_i32 : i32, i32
  }
  func.func @transform_2(%arg0: i32) -> (i32, i32) {
    %c0_i32 = arith.constant 0 : i32
    %c0_i32_0 = arith.constant 0 : i32
    %c0_i32_1 = arith.constant 0 : i32
    return %c0_i32, %c0_i32_0 : i32, i32
  }
  func.func @transform_3(%arg0: i32) -> (i32, i32) {
    %c0_i32 = arith.constant 0 : i32
    %c0_i32_0 = arith.constant 0 : i32
    %c0_i32_1 = arith.constant 0 : i32
    return %c0_i32, %c0_i32_0 : i32, i32
  }
  func.func @transform_4(%arg0: i32) -> (i32, i32) {
    %c0_i32 = arith.constant 0 : i32
    %c0_i32_0 = arith.constant 0 : i32
    %c0_i32_1 = arith.constant 0 : i32
    return %c0_i32, %c0_i32_0 : i32, i32
  }
  func.func @transform_5(%arg0: i32) -> (i32, i32) {
    %c0_i32 = arith.constant 0 : i32
    %c0_i32_0 = arith.constant 0 : i32
    %c0_i32_1 = arith.constant 0 : i32
    return %c0_i32, %c0_i32_0 : i32, i32
  }
  func.func @transform_6(%arg0: i32) -> (i32, i32) {
    %c0_i32 = arith.constant 0 : i32
    %c0_i32_0 = arith.constant 0 : i32
    %c0_i32_1 = arith.constant 0 : i32
    return %c0_i32, %c0_i32_0 : i32, i32
  }
  func.func @transform_7(%arg0: i32) -> (i32, i32) {
    %c0_i32 = arith.constant 0 : i32
    %c0_i32_0 = arith.constant 0 : i32
    %c0_i32_1 = arith.constant 0 : i32
    return %c0_i32, %c0_i32_0 : i32, i32
  }
  func.func @transform_8(%arg0: i32) -> (i32, i32) {
    %c0_i32 = arith.constant 0 : i32
    %c0_i32_0 = arith.constant 0 : i32
    %c0_i32_1 = arith.constant 0 : i32
    return %c0_i32, %c0_i32_0 : i32, i32
  }
  func.func @transform_9(%arg0: i32) -> (i32, i32) {
    %c0_i32 = arith.constant 0 : i32
    %c0_i32_0 = arith.constant 0 : i32
    return %arg0, %c0_i32 : i32, i32
  }
}

</mosaic_0001>

<bundles_post_ra>
// kernel: tpu_custom_call.1
= control target key start
LH: loop header
LB: loop body
LE: loop exit
PB: predicated region body
PF: predicated region fallthrough
CT: control target
= control target key end

     0   :  { %s2116_s0 = inlined_call_operand.vmem [shape: bf16[32,16], index: 0, kind: input, shape index: {}]   ;;  %s2117_s1 = inlined_call_operand.vmem [shape: bf16[32,16], index: 1, kind: input, shape index: {}]   ;;  %s2118_s2 = inlined_call_operand.hbm [shape: bf16[16,128], index: 2, kind: input, shape index: {}]   ;;  %s2119_s3 = inlined_call_operand.hbm [shape: bf16[128,128], index: 3, kind: input, shape index: {}]   ;;  %s2120_s4 = inlined_call_operand.hbm [shape: bf16[16,128], index: 4, kind: input, shape index: {}]   ;;  %s2121_s5 = inlined_call_operand.vmem [shape: bf16[128,128], index: 5, kind: input, shape index: {}]   ;;  %s2122_s6 = inlined_call_operand.hbm [shape: bf16[128,128], index: 6, kind: input, shape index: {}]   ;;  %s2123_s7 = inlined_call_operand.hbm [shape: bf16[128,128], index: 7, kind: input, shape index: {}]   ;;  %s2124_s8 = inlined_call_operand.vmem [shape: f32[1,640], index: 8, kind: input, shape index: {}]   ;;  %s2125_s9 = inlined_call_operand.hbm [shape: f32[32,128], index: 9, kind: output, shape index: {}]  }
   0x1   :  { %2134 = sst [smem:[#allocation21_spill]] %s2119_s3 }
   0x2   :  { %14 = vsyncpa [#allocation3], 0 }
   0x3   :  { %15 = vsyncpa [#allocation6], 0 }
   0x4   :  { %16 = vsyncpa [#allocation9], 0 }
   0x5   :  { %17 = vsyncpa [#allocation4], 0 }
   0x6   :  { %19 = vsyncpa [#allocation4 + $0x1], 0  ;;  %s1766_s30 = smov 0   ;;  %s1768_s10 = smov 0  }
   0x7   :  { %s1770_s11 = smov 0   ;;  %s1772_s12 = smov 0  }
   0x8 LB: > { %2135 = sst [smem:[#allocation16_spill]] %s1690_s30  ;;  %s1787_s13 = sadd.s32 4294967295, %s1702_s12   ;;  %s1702_s12 = sphi %s1772_s12, %s2157_s12   ;;  %s1698_s11 = sphi %s1770_s11, %s2159_s11   ;;  %s1694_s10 = sphi %s1768_s10, %s2161_s10   ;;  %s1690_s30 = sphi %s1766_s30, %s2160_s30  }
   0x9   : > { %2136 = sst [smem:[#allocation17_spill]] %s1698_s11  ;;  %s1156_s14 = sadd.s32 4294967294, %s1702_s12  }
   0xa   : > { %s1791_s15 = sadd.s32 1, %s1702_s12   ;;  %s231_s16 = sadd.s32 1, %s1698_s11 }
   0xb   : > { %2137 = sst [smem:[#allocation18_spill]] %s1791_s15  ;;  %s228_s17 = ssub.s32 %s1702_s12, %s1791_s15 }
   0xc   : > { %p241_p0 = scmp.ne.s32.totalorder %s1698_s11, %s1694_s10  ;;  %p229_p1 = scmp.eq.s32.totalorder %s228_s17, 0 }
   0xd   : > { %p242_p2 = scmp.eq.s32.totalorder %s1787_s13, 1  ;;  %p247_p3 = scmp.ne.s32.totalorder %s1694_s10, %s1690_s30 }
   0xe   : > { %p248_p4 = scmp.eq.s32.totalorder %s1156_s14, 1  ;;  %p1157_p7 = scmp.ge.s32.totalorder %s1702_s12, 1 }
   0xf   : > { %s1802_s18 = scalar_select %p229_p1, %s1698_s11, %s231_s16  }
  0x10   : > { %p1804_p5 = por %p242_p2, %p241_p0  ;;  %p1808_p6 = por %p248_p4, %p247_p3 }
  0x11   : > { %2138 = sst [smem:[#allocation19_spill]] %s1802_s18  ;;  %p255_p8 = scmp.lt.s32.totalorder %s1702_s12, 3 }
  0x12   : > { %s2139_s19 = scalar_select %p1804_p5, 1, 0 }
  0x13   : > { %s2140_s20 = scalar_select %p1808_p6, 1, 0 }
  0x14   : > { %p2126_p9 = scmp.eq.s32.totalorder %s1787_s13, 0  ;;  %p1815_p10 = pnand %p1157_p7, %p255_p8 }
  0x15   : > { %2141 = sst [smem:[#allocation20_spill]] %s2140_s20  ;;  %s1704_s22 = smov [#allocation5]  }
  0x16   : > { %s2142_s21 = scalar_select %p1815_p10, 1, 0 }
  0x17   : > { %p1378_p11 = pneg %p1815_p10  ;;  %s280_s23 = sshll.u32 %s1704_s22, 4  ;;  %s1821_s23 = int_to_ptr.vmem [resolvable:$true] %s280_s23 }
  0x18   : > { %s1705_s25 = smov [#allocation8]   ;;  %s1706_s27 = smov [#allocation2]  }
  0x19   : > { %p1825_p12 = pnand %p2126_p9, %p1378_p11  ;;  %s309_s26 = sshll.u32 %s1705_s25, 4  ;;  %s1829_s26 = int_to_ptr.vmem [resolvable:$true] %s309_s26 }
  0x1a   : > { %s1831_s28 = sshll.u32 %s1706_s27, 4  ;;  %s2144_s3 = sld [smem:[#allocation21_spill]]  ;;  %s268_s28 = int_to_ptr.vmem [resolvable:$true] %s1831_s28 }
  0x1b   : > { %p1841_p0 = pneg %p1825_p12 }
  0x20   : > { %s1488_s16 = scalar_lea.hbm %s2144_s3, 1024 }
  0x21   : > { %p1489_p13 = scmp.ne.s32.totalorder %s2144_s3, %s1488_s16  ;;  %p1495_p3 = scmp.lt.u32.totalorder %s1488_s16, %s2144_s3 }
  0x23   : > { %p1491_p1 = pnand %p1841_p0, %p1489_p13 }
  0x25   : > { %p1492_p2 = pneg %p1491_p1 }
  0x27   : > { %p1497_p4 = pnand %p1495_p3, %p1492_p2 }
  0x29   : > { %1500 = shalt.err (!%p1497_p4)
}
  0x2a   : > { %s1501_s29 = scalar_lea.vmem %s1821_s23, 1024  ;;  %p1509_p9 = scmp.lt.s32.totalorder %s1821_s23, %s1821_s23 }
  0x2b   : > { %p1502_p7 = scmp.ne.s32.totalorder %s1821_s23, %s1501_s29  ;;  %p1510_p6 = scmp.lt.s32.totalorder %s1501_s29, %s1501_s29 }
  0x2d   : > { %p1504_p8 = pnand %p1502_p7, %p1841_p0  ;;  %p1511_p13 = por %p1510_p6, %p1509_p9 }
  0x2f   : > { %p1505_p11 = pneg %p1504_p8 }
  0x31   : > { %p1512_p1 = pnand %p1511_p13, %p1505_p11 }
  0x33   : > { %1515 = shalt.err (!%p1512_p1)
}
  0x34   : > { %s1707_s14 = smov 64   ;;  %s1708_s16 = smov 4  }
  0x35   : > { %1384 = dma.hbm_to_vmem [thread:$0]  (!%p1825_p12), %s2144_s3, 1024, %s1821_s23, [#allocation6], %s1707_s14, %s1707_s14, %s1708_s16  }
  0x36   : > { %s1516_s29 = scalar_lea.hbm %s2122_s6, 1024 }
  0x37   : > { %p1517_p6 = scmp.ne.s32.totalorder %s2122_s6, %s1516_s29  ;;  %p1523_p3 = scmp.lt.u32.totalorder %s1516_s29, %s2122_s6 }
  0x39   : > { %p1519_p9 = pnand %p1517_p6, %p1841_p0 }
  0x3b   : > { %p1520_p2 = pneg %p1519_p9 }
  0x3d   : > { %p1525_p4 = pnand %p1523_p3, %p1520_p2 }
  0x3f   : > { %1528 = shalt.err (!%p1525_p4)
}
  0x40   : > { %s1529_s23 = scalar_lea.vmem %s1829_s26, 1024  ;;  %p1537_p13 = scmp.lt.s32.totalorder %s1829_s26, %s1829_s26 }
  0x41   : > { %p1530_p7 = scmp.ne.s32.totalorder %s1829_s26, %s1529_s23  ;;  %p1538_p1 = scmp.lt.s32.totalorder %s1529_s23, %s1529_s23 }
  0x43   : > { %p1532_p8 = pnand %p1530_p7, %p1841_p0  ;;  %p1539_p6 = por %p1538_p1, %p1537_p13 }
  0x45   : > { %p1533_p11 = pneg %p1532_p8 }
  0x47   : > { %p1540_p9 = pnand %p1539_p6, %p1533_p11 }
  0x49   : > { %1543 = shalt.err (!%p1540_p9)
}
  0x4a   : > { %1390 = dma.hbm_to_vmem [thread:$0]  (!%p1825_p12), %s2122_s6, 1024, %s1829_s26, [#allocation9], %s1707_s14, %s1707_s14, %s1708_s16  }
  0x4b   : > { %s1544_s17 = scalar_lea.hbm %s2118_s2, 128 }
  0x4c   : > { %p1545_p2 = scmp.ne.s32.totalorder %s2118_s2, %s1544_s17  ;;  %p1551_p7 = scmp.lt.u32.totalorder %s1544_s17, %s2118_s2 }
  0x4e   : > { %p1547_p3 = pnand %p1545_p2, %p1841_p0 }
  0x50   : > { %p1548_p4 = pneg %p1547_p3 }
  0x52   : > { %p1553_p8 = pnand %p1551_p7, %p1548_p4 }
  0x54   : > { %1556 = shalt.err (!%p1553_p8)
}
  0x55   : > { %s1557_s23 = scalar_lea.vmem %s268_s28, 128  ;;  %p1565_p6 = scmp.lt.s32.totalorder %s268_s28, %s268_s28 }
  0x56   : > { %p1558_p11 = scmp.ne.s32.totalorder %s268_s28, %s1557_s23  ;;  %p1566_p9 = scmp.lt.s32.totalorder %s1557_s23, %s1557_s23 }
  0x58   : > { %p1560_p13 = pnand %p1558_p11, %p1841_p0  ;;  %p1567_p5 = por %p1566_p9, %p1565_p6 }
  0x5a   : > { %p1561_p1 = pneg %p1560_p13 }
  0x5c   : > { %p1568_p10 = pnand %p1567_p5, %p1561_p1 }
  0x5e   : > { %1571 = shalt.err (!%p1568_p10)
}
  0x5f   : > { %1381 = dma.hbm_to_vmem [thread:$0]  (!%p1825_p12), %s2118_s2, 128, %s268_s28, [#allocation3], %s1707_s14, %s1707_s14, %s1708_s16  }
  0x60   : > { %s1709_s11 = smov [#allocation7]   ;;  %s1710_s20 = smov [#allocation10]  }
  0x61   : > { %s293_s15 = sshll.u32 %s1709_s11, 4  ;;  %s322_s17 = sshll.u32 %s1710_s20, 4  ;;  %s294_s15 = int_to_ptr.vmem [resolvable:$true] %s293_s15  ;;  %s323_s17 = int_to_ptr.vmem [resolvable:$true] %s322_s17 }
  0x62   : > { %s1572_s27 = scalar_lea.hbm %s2120_s4, 128 }
  0x63   : > { %p1573_p5 = scmp.ne.s32.totalorder %s2120_s4, %s1572_s27  ;;  %p1579_p3 = scmp.lt.u32.totalorder %s1572_s27, %s2120_s4 }
  0x65   : > { %p1575_p10 = pnand %p1573_p5, %p1841_p0 }
  0x67   : > { %p1576_p2 = pneg %p1575_p10 }
  0x69   : > { %p1581_p4 = pnand %p1579_p3, %p1576_p2 }
  0x6b   : > { %1584 = shalt.err (!%p1581_p4)
}
  0x6c   : > { %s1585_s28 = scalar_lea.vmem %s294_s15, 128  ;;  %p1593_p13 = scmp.lt.s32.totalorder %s294_s15, %s294_s15 }
  0x6d   : > { %p1586_p7 = scmp.ne.s32.totalorder %s294_s15, %s1585_s28  ;;  %p1594_p1 = scmp.lt.s32.totalorder %s1585_s28, %s1585_s28 }
  0x6f   : > { %p1588_p8 = pnand %p1586_p7, %p1841_p0  ;;  %p1595_p6 = por %p1594_p1, %p1593_p13 }
  0x71   : > { %p1589_p11 = pneg %p1588_p8 }
  0x73   : > { %p1596_p9 = pnand %p1595_p6, %p1589_p11 }
  0x75   : > { %1599 = shalt.err (!%p1596_p9)
}
  0x76   : > { %1387 = dma.hbm_to_vmem [thread:$0]  (!%p1825_p12), %s2120_s4, 128, %s294_s15, [#allocation6], %s1707_s14, %s1707_s14, %s1708_s16  }
  0x77   : > { %s1600_s22 = scalar_lea.hbm %s2123_s7, 1024 }
  0x78   : > { %p1601_p5 = scmp.ne.s32.totalorder %s2123_s7, %s1600_s22  ;;  %p1607_p3 = scmp.lt.u32.totalorder %s1600_s22, %s2123_s7 }
  0x7a   : > { %p1603_p10 = pnand %p1601_p5, %p1841_p0 }
  0x7c   : > { %p1604_p2 = pneg %p1603_p10 }
  0x7e   : > { %p1609_p4 = pnand %p1607_p3, %p1604_p2 }
  0x80   : > { %1612 = shalt.err (!%p1609_p4)
}
  0x81   : > { %s1613_s26 = scalar_lea.vmem %s323_s17, 1024  ;;  %p1621_p13 = scmp.lt.s32.totalorder %s323_s17, %s323_s17 }
  0x82   : > { %p1614_p7 = scmp.ne.s32.totalorder %s323_s17, %s1613_s26  ;;  %p1622_p1 = scmp.lt.s32.totalorder %s1613_s26, %s1613_s26 }
  0x84   : > { %p1616_p8 = pnand %p1614_p7, %p1841_p0  ;;  %p1623_p6 = por %p1622_p1, %p1621_p13 }
  0x86   : > { %p1617_p11 = pneg %p1616_p8 }
  0x88   : > { %p1624_p9 = pnand %p1623_p6, %p1617_p11 }
  0x8a   : > { %1627 = shalt.err (!%p1624_p9)
}
  0x8b   : > { %1393 = dma.hbm_to_vmem [thread:$0]  (!%p1825_p12), %s2123_s7, 1024, %s323_s17, [#allocation9], %s1707_s14, %s1707_s14, %s1708_s16  }
  0x8c   : > { %p2146_p5 = scmp.ne.s32.totalorder %s2142_s21, 0 }
  0x8d   : > { %p2147_p0 = scmp.eq.s32.totalorder (!%p2146_p5), %s1787_s13, 0 }
  0x8e   : > { %359 = sbr.rel (%p2146_p5) target bundleno = 1274 (0x4fa), region = 56 }
  0x95   : > { %1673 = dma.done.wait (%p2147_p0), [#allocation3], 128   ;;  %p2148_p10 = pmov %p2147_p0 }
  0x96   : > { %p2149_p2 = pmov %p2147_p0 }
  0x97   : > { %1675 = vsyncadd (%p2148_p10), [#allocation3], 4294967168 }
  0x98   : > { %1677 = dma.done.wait (%p2149_p2), [#allocation6], 1152   ;;  %p2150_p3 = pmov %p2147_p0 }
  0x99   : > { %p2151_p4 = pmov %p2147_p0 }
  0x9a   : > { %1679 = vsyncadd (%p2150_p3), [#allocation6], 4294966144 }
  0x9b   : > { %1681 = dma.done.wait (%p2151_p4), [#allocation9], 2048   ;;  %p2152_p12 = pmov %p2147_p0 }
  0x9c   : > { %s1171_s18 = sshll.u32 %s1787_s13, 1  ;;  %v1711_v0 = vmov 0.0   ;;  %vm1712_vm0 = vmmov 0   ;;  %v1452_v1 = vld [vmem:[#allocation2] sm:$0xff]   ;;  %vm454_vm1 = vcmask 130048   ;;  %v1454_v3 = vld [vmem:[#allocation5] sm:$0xff]  }
  0x9d   : > { %1683 = vsyncadd (%p2152_p12), [#allocation9], 4294965248  ;;  %1264 = vmatprep.subr.bf16.mxu0 %v1711_v0  ;;  %1266 = vmatprep.mubr.msk.bf16.mxu0 %vm1712_vm0, %v1711_v0  ;;  %p417_p7 = scmp.lt.s32.totalorder %s1171_s18, 3  ;;  %v1455_v4 = vld [vmem:[#allocation5 + $0x8] sm:$0xff]   ;;  %v1456_v5 = vld [vmem:[#allocation5 + $0x10] sm:$0xff]   ;;  %s413_s23 = sand.u32 1, %s1694_s10  }
  0x9e   : > { %1270 = vmatprep.subr.bf16.mxu1 %v1711_v0  ;;  %1286 = vmatprep.mubr.msk.bf16.mxu1 %vm1712_vm0, %v1711_v0  ;;  %v1457_v6 = vld [vmem:[#allocation5 + $0x18] sm:$0xff]   ;;  %v1458_v7 = vld [vmem:[#allocation5 + $0x20] sm:$0xff]   ;;  %v1459_v8 = vld [vmem:[#allocation5 + $0x28] sm:$0xff]   ;;  %s1170_s26 = sshll.u32 %s413_s23, 4  ;;  %s1223_s24 = sshll.u32 %s1787_s13, 8 }
  0x9f   : > { %s2163_s18 = smov (!%p417_p7, %s1171_s18), 3  ;;  %1265 = vmatpush3.bf16.msra.mxu0 %v1452_v1  ;;  %1271 = vmatpush3.bf16.msra.mxu1 %v1454_v3  ;;  %v1460_v9 = vld [vmem:[#allocation5 + $0x30] sm:$0xff]   ;;  %v1461_v10 = vld [vmem:[#allocation5 + $0x38] sm:$0xff]   ;;  %v1463_v12 = vld [vmem:[%s2121_s5 + $0x8] sm:$0xff]   ;;  %s2073_s17 = scalar_lea.hbm %s2125_s9, %s1223_s24 }
  0xa0   : > { %s1172_s21 = sshll.u32 %s2163_s18, 2  ;;  %1290 = vmatprep.subr.bf16.mxu0 %v1711_v0  ;;  %1272 = vmatprep.subr.bf16.mxu1 %v1711_v0  ;;  %v1462_v11 = vld [vmem:[%s2121_s5] sm:$0xff]   ;;  %v1464_v13 = vld [vmem:[%s2121_s5 + $0x10] sm:$0xff]   ;;  %v1465_v14 = vld [vmem:[%s2121_s5 + $0x18] sm:$0xff]   ;;  %s415_s18 = scalar_lea.vmem [#allocation11], %s1170_s26 }
  0xa1   : > { %s426_s16 = scalar_lea.vmem %s2117_s1, %s1172_s21  ;;  %s1982_s30 = scalar_lea.vmem %s2116_s0, %s1172_s21  ;;  %v1466_v15 = vld [vmem:[%s2121_s5 + $0x20] sm:$0xff]   ;;  %v1467_v16 = vld [vmem:[%s2121_s5 + $0x28] sm:$0xff]   ;;  %v1469_v28 = vld [vmem:[%s2121_s5 + $0x30] sm:$0xff]  }
  0xa2   : > { %v1453_v2 = vld [vmem:[%s426_s16] sm:$0xff]   ;;  %v1468_v26 = vld [vmem:[#allocation7] sm:$0xff]   ;;  %v1470_v29 = vld [vmem:[%s2121_s5 + $0x38] sm:$0xff]   ;;  %s1032_s21 = sshll.u32 %s415_s18, 4  ;;  %s2075_s3 = scalar_lea.sflag [#allocation4], %s413_s23  ;;  %s2068_s21 = int_to_ptr.vmem [resolvable:$true] %s1032_s21 }
  0xa3   : > { %1267 = vmatmul.mubr.msk.bf16.vlgmr.msra.gmra.mrb[0].mxu0 %vm454_vm1, %v1453_v2  ;;  %1273 = vmatpush3.bf16.msra.mxu1 %v1455_v4  ;;  %v1175_v17 = vld [vmem:[%s2124_s8] ss:$0 sm:$0xff]  ;;  %v1179_v31 = vld [vmem:[%s2124_s8 + $0x1] ss:$0 sm:$0xff]  ;;  %v1472_v38 = vld [vmem:[#allocation8] sm:$0xff]   ;;  %s1628_s13 = scalar_lea.vmem %s2068_s21, 256 }
  0xa4   : > { %1306 = vmatprep.mubr.msk.bf16.mxu0 %vm1712_vm0, %v1711_v0  ;;  %1274 = vmatprep.subr.bf16.mxu1 %v1711_v0  ;;  %v1471_v30 = vld [vmem:[%s1982_s30] sm:$0xff]   ;;  %v1473_v40 = vld [vmem:[#allocation8 + $0x8] sm:$0xff]   ;;  %v1475_v42 = vld [vmem:[#allocation8 + $0x18] sm:$0xff]   ;;  %p1629_p8 = scmp.ne.s32.totalorder %s2068_s21, %s1628_s13  ;;  %p2153_p11 = scmp.ne.s32.totalorder %s2139_s19, 0 }
  0xa5   : > { %1291 = vmatpush3.bf16.msra.mxu0 %v1462_v11  ;;  %v1474_v41 = vld [vmem:[#allocation8 + $0x10] sm:$0xff]   ;;  %v1476_v43 = vld [vmem:[#allocation8 + $0x20] sm:$0xff]   ;;  %v1477_v46 = vld [vmem:[#allocation8 + $0x28] sm:$0xff]   ;;  %s1713_s11 = smov [#allocation11]  }
  0xa6   : > { %1292 = vmatprep.subr.bf16.mxu0 %v1711_v0  ;;  %v1478_v49 = vld [vmem:[#allocation8 + $0x30] sm:$0xff]   ;;  %v1479_v50 = vld [vmem:[#allocation8 + $0x38] sm:$0xff]   ;;  %v1480_v51 = vld [vmem:[#allocation10] sm:$0xff]   ;;  %p1630_p13 = pnand %p1629_p8, %p2153_p11  ;;  %s1632_s20 = sshll.u32 %s1713_s11, 4  ;;  %s1633_s20 = int_to_ptr.vmem [resolvable:$false] %s1632_s20 }
  0xa7   : > { %1275 = vmatpush3.bf16.msra.mxu1 %v1456_v5  ;;  %v1481_v52 = vld [vmem:[#allocation10 + $0x8] sm:$0xff]   ;;  %v1482_v53 = vld [vmem:[#allocation10 + $0x10] sm:$0xff]   ;;  %v1483_v54 = vld [vmem:[#allocation10 + $0x18] sm:$0xff]   ;;  %s1634_s22 = scalar_lea.vmem %s1633_s20, 512  ;;  %p1635_p6 = scmp.lt.s32.totalorder %s2068_s21, %s1633_s20 }
  0xa8   : > { %1276 = vmatprep.subr.bf16.mxu1 %v1711_v0  ;;  %v1484_v55 = vld [vmem:[#allocation10 + $0x20] sm:$0xff]   ;;  %v1485_v56 = vld [vmem:[#allocation10 + $0x28] sm:$0xff]   ;;  %v1199_v58 = vld [vmem:[%s2124_s8 + $0x2] ss:$0 sm:$0xff]  ;;  %p1631_p1 = pneg %p1630_p13  ;;  %p1636_p9 = scmp.lt.s32.totalorder %s1634_s22, %s1628_s13 }
  0xa9   : > { %1293 = vmatpush3.bf16.msra.mxu0 %v1463_v12 }
  0xaa   : > { %1294 = vmatprep.subr.bf16.mxu0 %v1711_v0  ;;  %p1637_p5 = por %p1636_p9, %p1635_p6 }
  0xab   : > { %1277 = vmatpush3.bf16.msra.mxu1 %v1457_v6  ;;  %v1486_v6 = vld [vmem:[#allocation10 + $0x30] sm:$0xff]  }
  0xac   : > { %1278 = vmatprep.subr.bf16.mxu1 %v1711_v0  ;;  %p1638_p0 = pnand %p1637_p5, %p1631_p1 }
  0xad   : > { %1295 = vmatpush3.bf16.msra.mxu0 %v1464_v13 }
  0xae   : > { %1296 = vmatprep.subr.bf16.mxu0 %v1711_v0 }
  0xaf   : > { %1279 = vmatpush3.bf16.msra.mxu1 %v1458_v7  ;;  %v1487_v7 = vld [vmem:[#allocation10 + $0x38] sm:$0xff]  }
  0xb0   : > { %1280 = vmatprep.subr.bf16.mxu1 %v1711_v0 }
  0xb1   : > { %1297 = vmatpush3.bf16.msra.mxu0 %v1465_v14 }
  0xb2   : > { %1298 = vmatprep.subr.bf16.mxu0 %v1711_v0 }
  0xb3   : > { %1281 = vmatpush3.bf16.msra.mxu1 %v1459_v8  ;;  %v1200_v8 = vld [vmem:[%s2124_s8 + $0x3] ss:$0 sm:$0xff] }
  0xb4   : > { %1282 = vmatprep.subr.bf16.mxu1 %v1711_v0 }
  0xb5   : > { %1299 = vmatpush3.bf16.msra.mxu0 %v1466_v15 }
  0xb6   : > { %1300 = vmatprep.subr.bf16.mxu0 %v1711_v0 }
  0xb7   : > { %1283 = vmatpush3.bf16.msra.mxu1 %v1460_v9 }
  0xb8   : > { %1284 = vmatprep.subr.bf16.mxu1 %v1711_v0 }
  0xb9   : > { %1301 = vmatpush3.bf16.msra.mxu0 %v1467_v16 }
  0xba   : > { %1302 = vmatprep.subr.bf16.mxu0 %v1711_v0 }
  0xbb   : > { %1285 = vmatpush3.bf16.msra.mxu1 %v1461_v10 }
  0xbc   : > { %1310 = vmatprep.subr.bf16.mxu1 %v1711_v0 }
  0xbd   : > { %1303 = vmatpush3.bf16.msra.mxu0 %v1469_v28 }
  0xbe   : > { %1304 = vmatprep.subr.bf16.mxu0 %v1711_v0 }
  0xc1   : > { %1305 = vmatpush3.bf16.msra.mxu0 %v1470_v29 }
  0xc2   : > { %1316 = vmatprep.subr.bf16.mxu0 %v1711_v0 }
 0x176   : > { %v492_v18 = vpop.f32.mrb[0].mxu0 }
 0x177   : > { %v493_v19 = vadd.f32 %v1175_v17, %v492_v18  ;;  %v1268_v20 = vpop.f32.mrb[1].mxu0 }
 0x178   : > { %v495_v21 = vpop.f32.mrb[2].mxu0 }
 0x179   : > { %v496_v22 = vadd.f32 %v1175_v17, %v495_v21  ;;  %v1269_v23 = vpop.f32.mrb[3].mxu0  ;;  %v499_v24 = vmax.f32 %v493_v19, 0.0 }
 0x17b   : > { %v500_v25 = vmax.f32 %v496_v22, 0.0 }
 0x17d   : > { %v501_v27 = vpack.c.bf16 %v500_v25, %v499_v24 }
 0x17f   : > { %1287 = vmatmul.mubr.bf16.vlgmr.msra.gmra.mrb[0].mxu1 %v501_v27 }
 0x180   : > { %1311 = vmatpush3.bf16.msra.mxu1 %v1468_v26  ;;  %1312 = vmatprep.mubr.msk.bf16.mxu1 %vm1712_vm0, %v1711_v0 }
 0x181   : > { %1336 = vmatprep.subr.bf16.mxu1 %v1711_v0 }
 0x187   : > { %1313 = vmatmul.mubr.msk.bf16.vlgmr.msra.gmra.mrb[4].mxu1 %vm454_vm1, %v1471_v30 }
 0x188   : > { %1352 = vmatprep.mubr.msk.bf16.mxu1 %vm1712_vm0, %v1711_v0  ;;  %1337 = vmatpush3.bf16.msra.mxu1 %v1480_v51 }
 0x189   : > { %1338 = vmatprep.subr.bf16.mxu1 %v1711_v0 }
 0x18c   : > { %1339 = vmatpush3.bf16.msra.mxu1 %v1481_v52 }
 0x18d   : > { %1340 = vmatprep.subr.bf16.mxu1 %v1711_v0 }
 0x190   : > { %1341 = vmatpush3.bf16.msra.mxu1 %v1482_v53 }
 0x191   : > { %1342 = vmatprep.subr.bf16.mxu1 %v1711_v0 }
 0x194   : > { %1343 = vmatpush3.bf16.msra.mxu1 %v1483_v54 }
 0x195   : > { %1344 = vmatprep.subr.bf16.mxu1 %v1711_v0 }
 0x198   : > { %1345 = vmatpush3.bf16.msra.mxu1 %v1484_v55 }
 0x199   : > { %1346 = vmatprep.subr.bf16.mxu1 %v1711_v0 }
 0x19c   : > { %1347 = vmatpush3.bf16.msra.mxu1 %v1485_v56 }
 0x19d   : > { %1348 = vmatprep.subr.bf16.mxu1 %v1711_v0 }
 0x1a0   : > { %1349 = vmatpush3.bf16.msra.mxu1 %v1486_v6 }
 0x1a1   : > { %1350 = vmatprep.subr.bf16.mxu1 %v1711_v0 }
 0x1a4   : > { %1351 = vmatpush3.bf16.msra.mxu1 %v1487_v7 }
 0x252   : > { %v607_v32 = vpop.f32.mrb[0].mxu1 }
 0x253   : > { %v1288_v33 = vpop.f32.mrb[1].mxu1  ;;  %v608_v35 = vadd.f32 %v1179_v31, %v607_v32 }
 0x254   : > { %v610_v34 = vpop.f32.mrb[2].mxu1 }
 0x255   : > { %v611_v36 = vadd.f32 %v1179_v31, %v610_v34  ;;  %v1289_v37 = vpop.f32.mrb[3].mxu1 }
 0x257   : > { %v616_v39 = vpack.c.bf16 %v611_v36, %v608_v35 }
 0x259   : > { %1307 = vmatmul.mubr.bf16.vlgmr.msra.gmra.mrb[4].mxu0 %v616_v39 }
 0x25a   : > { %1317 = vmatpush3.bf16.msra.mxu0 %v1472_v38  ;;  %1332 = vmatprep.mubr.msk.bf16.mxu0 %vm1712_vm0, %v1711_v0  ;;  %v770_v44 = vpop.f32.mrb[4].mxu1 }
 0x25b   : > { %1318 = vmatprep.subr.bf16.mxu0 %v1711_v0  ;;  %v1314_v45 = vpop.f32.mrb[5].mxu1 }
 0x25c   : > { %v773_v47 = vpop.f32.mrb[6].mxu1 }
 0x25d   : > { %v1315_v48 = vpop.f32.mrb[7].mxu1 }
 0x25e   : > { %1319 = vmatpush3.bf16.msra.mxu0 %v1473_v40 }
 0x25f   : > { %1320 = vmatprep.subr.bf16.mxu0 %v1711_v0 }
 0x262   : > { %1321 = vmatpush3.bf16.msra.mxu0 %v1474_v41 }
 0x263   : > { %1322 = vmatprep.subr.bf16.mxu0 %v1711_v0 }
 0x266   : > { %1323 = vmatpush3.bf16.msra.mxu0 %v1475_v42 }
 0x267   : > { %1324 = vmatprep.subr.bf16.mxu0 %v1711_v0 }
 0x26a   : > { %1325 = vmatpush3.bf16.msra.mxu0 %v1476_v43 }
 0x26b   : > { %1326 = vmatprep.subr.bf16.mxu0 %v1711_v0 }
 0x26e   : > { %1327 = vmatpush3.bf16.msra.mxu0 %v1477_v46 }
 0x26f   : > { %1328 = vmatprep.subr.bf16.mxu0 %v1711_v0 }
 0x272   : > { %1329 = vmatpush3.bf16.msra.mxu0 %v1478_v49 }
 0x273   : > { %1330 = vmatprep.subr.bf16.mxu0 %v1711_v0  ;;  %v1209_v0 = vld [vmem:[%s2124_s8 + $0x4] ss:$0 sm:$0xff] }
 0x276   : > { %1331 = vmatpush3.bf16.msra.mxu0 %v1479_v50 }
 0x32c   : > { %v715_v57 = vpop.f32.mrb[4].mxu0 }
 0x32d   : > { %v771_v59 = vadd.f32 %v770_v44, %v715_v57  ;;  %v1308_v60 = vpop.f32.mrb[5].mxu0 }
 0x32e   : > { %v718_v61 = vpop.f32.mrb[6].mxu0 }
 0x32f   : > { %v784_v62 = vadd.f32 %v1199_v58, %v771_v59  ;;  %v774_v63 = vadd.f32 %v773_v47, %v718_v61  ;;  %v1309_v1 = vpop.f32.mrb[7].mxu0 }
 0x331   : > { %v785_v2 = vadd.f32 %v1199_v58, %v774_v63  ;;  %v786_v3 = vmax.f32 %v784_v62, 0.0 }
 0x333   : > { %v787_v4 = vmax.f32 %v785_v2, 0.0 }
 0x335   : > { %v788_v5 = vpack.c.bf16 %v787_v4, %v786_v3 }
 0x337   : > { %1333 = vmatmul.mubr.bf16.vlgmr.msra.gmra.mrb[8].mxu0 %v788_v5 }
 0x40a   : > { %v894_v9 = vpop.f32.mrb[8].mxu0 }
 0x40b   : > { %v895_v10 = vadd.f32 %v1200_v8, %v894_v9  ;;  %v1334_v11 = vpop.f32.mrb[9].mxu0 }
 0x40c   : > { %v897_v12 = vpop.f32.mrb[10].mxu0 }
 0x40d   : > { %v898_v13 = vadd.f32 %v1200_v8, %v897_v12  ;;  %v1335_v14 = vpop.f32.mrb[11].mxu0  ;;  %v901_v15 = vmax.f32 %v895_v10, 0.0 }
 0x40f   : > { %v902_v16 = vmax.f32 %v898_v13, 0.0 }
 0x411   : > { %v903_v17 = vpack.c.bf16 %v902_v16, %v901_v15 }
 0x413   : > { %1353 = vmatmul.mubr.bf16.vlgmr.msra.gmra.mrb[8].mxu1 %v903_v17 }
 0x4e6   : > { %v1009_v18 = vpop.f32.mrb[8].mxu1 }
 0x4e7   : > { %v1010_v19 = vadd.f32 %v1209_v0, %v1009_v18  ;;  %v1354_v20 = vpop.f32.mrb[9].mxu1 }
 0x4e8   : > { %v1012_v21 = vpop.f32.mrb[10].mxu1 }
 0x4e9   : > { %1016 = vst [vmem:[%s415_s18] sm:$0xff] %v1010_v19  ;;  %v1013_v22 = vadd.f32 %v1209_v0, %v1012_v21  ;;  %v1355_v23 = vpop.f32.mrb[11].mxu1 }
 0x4eb   : > { %1017 = vst [vmem:[%s415_s18 + $0x8] sm:$0xff] %v1013_v22 }
 0x4ec   : > { %1641 = shalt.err (!%p1638_p0)
}
 0x4ed   : > { %s1642_s30 = scalar_lea.hbm %s2073_s17, 256  ;;  %s1646_s29 = scalar_lea.hbm %s2125_s9, 512 }
 0x4ee   : > { %p1643_p10 = scmp.ne.s32.totalorder %s2073_s17, %s1642_s30  ;;  %p1647_p4 = scmp.lt.u32.totalorder %s2073_s17, %s2125_s9 }
 0x4ef   : > { %p1648_p12 = scmp.lt.u32.totalorder %s1646_s29, %s1642_s30  ;;  %p1650_p8 = scmp.lt.u32.totalorder %s1642_s30, %s2073_s17 }
 0x4f0   : > { %p1644_p2 = pnand %p1643_p10, %p2153_p11 }
 0x4f1   : > { %p1649_p7 = por %p1648_p12, %p1647_p4 }
 0x4f2   : > { %p1645_p3 = pneg %p1644_p2 }
 0x4f3   : > { %p1651_p13 = por %p1650_p8, %p1649_p7 }
 0x4f5   : > { %p1652_p1 = pnand %p1651_p13, %p1645_p3 }
 0x4f7   : > { %1655 = shalt.err (!%p1652_p1)
}
 0x4f8   : > { %s1714_s15 = smov 128   ;;  %s1715_s28 = smov 8  }
 0x4f9   : > { %1376 = dma.vmem_to_hbm [thread:$0]  (%p2153_p11), %s2068_s21, 256, %s2073_s17, %s2075_s3, %s1714_s15, %s1714_s15, %s1715_s28  }
 0x4fa PF: > { %s2154_s18 = sld [smem:[#allocation16_spill]]  ;;  %s2155_s24 = sld [smem:[#allocation20_spill]] }
 0x4fb   : > { %p1408_p6 = scmp.ge.s32.totalorder %s1702_s12, 2 }
 0x500   : > { %s1047_s14 = sand.u32 1, %s2154_s18   ;;  %p2156_p9 = scmp.ne.s32.totalorder %s2155_s24, 0 }
 0x501   : > { %s1048_s16 = scalar_lea.sflag [#allocation4], %s1047_s14 }
 0x502   : > { %p1395_p5 = pnand %p1408_p6, %p2156_p9 }
 0x504   : > { %1685 = dma.done.wait (!%p1395_p5), %s1048_s16, 256  }
 0x505   : > { %1687 = vsyncadd (!%p1395_p5), %s1048_s16, 4294967040  ;;  %s2157_s12 = sld [smem:[#allocation18_spill]]  ;;  %s2158_s13 = sld [smem:[#allocation17_spill]] }
 0x506   : > { %s2159_s11 = sld [smem:[#allocation19_spill]]  ;;  %s2160_s30 = smov %s1694_s10 }
 0x50b   : > { %p22_p0 = scmp.ge.s32.totalorder %s2157_s12, 4   ;;  %s2161_s10 = smov %s2158_s13 }
 0x50d   :  { %24 = sbr.rel (!%p22_p0) target bundleno = 8 (0x8), region = 115 }
 0x514   :  { %1053 = vsyncpa [#allocation3], 1 }
 0x515   :  { %1055 = vsyncpa [#allocation3 + $0x1], 1 }
 0x516   :  { %1056 = vsyncpa [#allocation6], 1 }
 0x517   :  { %1057 = vsyncpa [#allocation9], 1 }
 0x518   :  { %1058 = vsyncpa [#allocation4], 1 }
 0x519   :  { %1060 = vsyncpa [#allocation4 + $0x1], 1 }

</bundles_post_ra>
